<compile_context>
chip_gen: v7x
topology: tpu7x:2x2x1
jax: 0.10.0
libtpu: 0.0.40
codegen_flags: <defaults>
</compile_context>

<pallas_src>
import math
from functools import partial

import jax
import jax.numpy as jnp
from jax import lax
from jax.experimental import pallas as pl
from jax.experimental.pallas import tpu as pltpu


# ---------------------------------------------------------------------------
# Small-problem path: one grid step per batch element, all heads fused.
# ---------------------------------------------------------------------------
def _sdpa_fused_kernel(q_ref, k_ref, v_ref, o_ref, *, inv_sqrt_n):
    # refs are (H, S, D) slices of one batch element.
    q = q_ref[...] * inv_sqrt_n          # fold 1/sqrt(n) into q (H*S*D muls)
    k = k_ref[...]
    v = v_ref[...]

    # scores: (H, S, S); contract D directly, batched over heads.
    s = lax.dot_general(
        q, k,
        dimension_numbers=(((2,), (2,)), ((0,), (0,))),
        preferred_element_type=jnp.float32,
    )

    # numerically-stable softmax along the last axis (f32 math).
    m = jnp.max(s, axis=-1, keepdims=True)
    e = jnp.exp(s - m)
    denom = jnp.sum(e, axis=-1, keepdims=True)
    p = e * pl.reciprocal(denom, approx=True)

    # output: (H, S, D)
    out = lax.dot_general(
        p.astype(v.dtype), v,
        dimension_numbers=(((2,), (1,)), ((0,), (0,))),
        preferred_element_type=jnp.float32,
    )
    o_ref[...] = out.astype(o_ref.dtype)
    # TODO(synk): for D < 128, packing heads into a lane-dense (S, H*D) output
    # slab would avoid masked vst partial stores; skipped to keep the (B,H,S,D)
    # layout identical to the PyTorch module.


def _sdpa_fused(q, k, v, inv_sqrt_n):
    B, H, S, D = q.shape
    spec = pl.BlockSpec(
        (pl.Squeezed(), H, S, D),
        lambda b: (b, 0, 0, 0),
    )
    return pl.pallas_call(
        partial(_sdpa_fused_kernel, inv_sqrt_n=inv_sqrt_n),
        out_shape=jax.ShapeDtypeStruct((B, H, S, D), q.dtype),
        grid_spec=pltpu.PrefetchScalarGridSpec(
            num_scalar_prefetch=0,
            grid=(B,),
            in_specs=[spec, spec, spec],
            out_specs=spec,
        ),
        compiler_params=pltpu.CompilerParams(
            dimension_semantics=("parallel",),
        ),
    )(q, k, v)


# ---------------------------------------------------------------------------
# Flash-style tiled path: online softmax, never materializes the SxS matrix.
# ---------------------------------------------------------------------------
def _sdpa_flash_kernel(q_ref, k_ref, v_ref, o_ref, m_sc, l_sc, acc_sc, *,
                       inv_sqrt_n):
    # q_ref: (tq, D), k_ref/v_ref: (tk, D) -- one (b, h, q-tile, k-tile) step.
    kv_idx = pl.program_id(3)

    @pl.when(kv_idx == 0)
    def _init():
        m_sc[...] = jnp.full(m_sc.shape, -jnp.inf, dtype=m_sc.dtype)
        l_sc[...] = jnp.zeros(l_sc.shape, dtype=l_sc.dtype)
        acc_sc[...] = jnp.zeros(acc_sc.shape, dtype=acc_sc.dtype)

    q = q_ref[...] * inv_sqrt_n          # fold scale into the (tq, D) tile
    # scores tile (tq, tk): contract D directly, f32 accumulate on the MXU.
    s = lax.dot_general(
        q, k_ref[...],
        dimension_numbers=(((1,), (1,)), ((), ())),
        preferred_element_type=jnp.float32,
    )

    m_prev = m_sc[...]
    m_new = jnp.maximum(m_prev, jnp.max(s, axis=-1, keepdims=True))
    alpha = jnp.exp(m_prev - m_new)
    p = jnp.exp(s - m_new)

    l_sc[...] = alpha * l_sc[...] + jnp.sum(p, axis=-1, keepdims=True)
    acc_sc[...] = alpha * acc_sc[...] + jnp.dot(
        p.astype(v_ref.dtype), v_ref[...], preferred_element_type=jnp.float32
    )
    m_sc[...] = m_new

    @pl.when(kv_idx == pl.num_programs(3) - 1)
    def _finalize():
        o_ref[...] = (
            acc_sc[...] * pl.reciprocal(l_sc[...], approx=True)
        ).astype(o_ref.dtype)


def _pick_tile(s):
    # Prefer MXU-friendly 128-multiples that divide S exactly (works for
    # v5e/v6e/v7x per the tile-sizing guidance).
    for t in (256, 128):
        if s % t == 0:
            return t
    # Otherwise: largest divisor of S <= 256 that is sublane (8) aligned.
    for t in range(min(s, 256), 7, -1):
        if s % t == 0 and t % 8 == 0:
            return t
    return s  # full extent is always a legal block dim


def _sdpa_flash(q, k, v, inv_sqrt_n):
    B, H, S, D = q.shape
    tq = _pick_tile(S)
    tk = _pick_tile(S)

    q_spec = pl.BlockSpec(
        (pl.Squeezed(), pl.Squeezed(), tq, D),
        lambda b, h, qi, ki: (b, h, qi, 0),
    )
    kv_spec = pl.BlockSpec(
        (pl.Squeezed(), pl.Squeezed(), tk, D),
        lambda b, h, qi, ki: (b, h, ki, 0),
    )
    o_spec = pl.BlockSpec(
        (pl.Squeezed(), pl.Squeezed(), tq, D),
        lambda b, h, qi, ki: (b, h, qi, 0),
    )

    return pl.pallas_call(
        partial(_sdpa_flash_kernel, inv_sqrt_n=inv_sqrt_n),
        out_shape=jax.ShapeDtypeStruct((B, H, S, D), q.dtype),
        grid_spec=pltpu.PrefetchScalarGridSpec(
            num_scalar_prefetch=0,
            grid=(B, H, S // tq, S // tk),
            in_specs=[q_spec, kv_spec, kv_spec],
            out_specs=o_spec,
            scratch_shapes=[
                pltpu.VMEM((tq, 1), jnp.float32),   # running max
                pltpu.VMEM((tq, 1), jnp.float32),   # running denominator
                pltpu.VMEM((tq, D), jnp.float32),   # f32 output accumulator
            ],
        ),
        compiler_params=pltpu.CompilerParams(
            dimension_semantics=("parallel", "parallel", "parallel", "arbitrary"),
            vmem_limit_bytes=32 * 1024 * 1024,   # explicit budget (safe on v7x)
        ),
    )(q, k, v)


# ---------------------------------------------------------------------------
# Public wrapper (mirrors ScaledDotProductAttention.forward(q, k, v, n)).
# ---------------------------------------------------------------------------
def scaled_dot_product_attention(q, k, v, n):
    B, H, S, D = q.shape
    inv_sqrt_n = float(1.0 / math.sqrt(n))

    # Tiny problems: per-grid-step overhead dominates -> fuse heads per batch.
    score_bytes = H * S * S * 4
    slab_bytes = 4 * H * S * D * q.dtype.itemsize
    if S <= 128 and (score_bytes + slab_bytes) <= (4 << 20):
        return _sdpa_fused(q, k, v, inv_sqrt_n)
    return _sdpa_flash(q, k, v, inv_sqrt_n)


def _reference(q, k, v, n):
    attn = jnp.einsum("bhqd,bhkd->bhqk", q, k) / math.sqrt(n)
    p = jax.nn.softmax(attn, axis=-1)
    return jnp.einsum("bhqk,bhkd->bhqd", p, v)


if __name__ == "__main__":
    key = jax.random.PRNGKey(0)
    k_small, k_large = jax.random.split(key)

    # --- tiny shape (module's typical call) -> fused single-step path --------
    B, H, S, D = 2, 4, 8, 32
    n = D
    kq, kk, kv = jax.random.split(k_small, 3)
    q = jax.random.normal(kq, (B, H, S, D), dtype=jnp.float32)
    k = jax.random.normal(kk, (B, H, S, D), dtype=jnp.float32)
    v = jax.random.normal(kv, (B, H, S, D), dtype=jnp.float32)

    out = jax.block_until_ready(scaled_dot_product_attention(q, k, v, n))
    ref = _reference(q, k, v, n)
    assert out.shape == (B, H, S, D)
    assert jnp.allclose(out, ref, atol=2e-2, rtol=2e-2), "fused path mismatch"

    # --- moderate shape -> flash-style tiled path (multiple kv tiles) --------
    B2, H2, S2, D2 = 1, 2, 512, 128
    n2 = D2
    kq2, kk2, kv2 = jax.random.split(k_large, 3)
    q2 = jax.random.normal(kq2, (B2, H2, S2, D2), dtype=jnp.float32)
    k2 = jax.random.normal(kk2, (B2, H2, S2, D2), dtype=jnp.float32)
    v2 = jax.random.normal(kv2, (B2, H2, S2, D2), dtype=jnp.float32)

    out2 = jax.block_until_ready(scaled_dot_product_attention(q2, k2, v2, n2))
    ref2 = _reference(q2, k2, v2, n2)
    assert out2.shape == (B2, H2, S2, D2)
    assert jnp.allclose(out2, ref2, atol=2e-2, rtol=2e-2), "flash path mismatch"

    print("KERNEL_OK")
</pallas_src>

<mosaic_0001>
module attributes {stable_mosaic.version = 11 : i64} {
  func.func @_sdpa_fused_kernel(%arg0: i32, %arg1: memref<1x4x8x32xf32, #tpu.memory_space<vmem>>, %arg2: memref<1x4x8x32xf32, #tpu.memory_space<vmem>>, %arg3: memref<1x4x8x32xf32, #tpu.memory_space<vmem>>, %arg4: memref<1x4x8x32xf32, #tpu.memory_space<vmem>>) attributes {dimension_semantics = [#tpu.dimension_semantics<parallel>], iteration_bounds = array<i64: 2>, scalar_prefetch = 0 : i64, scratch_operands = 0 : i64, tpu.core_type = #tpu.core_type<tc>, window_params = [{transform_indices = @transform_0, window_bounds = array<i64: 1, 4, 8, 32>}, {transform_indices = @transform_1, window_bounds = array<i64: 1, 4, 8, 32>}, {transform_indices = @transform_2, window_bounds = array<i64: 1, 4, 8, 32>}, {transform_indices = @transform_3, window_bounds = array<i64: 1, 4, 8, 32>}]} {
    %c0 = arith.constant 0 : index
    %c0_0 = arith.constant 0 : index
    %c0_1 = arith.constant 0 : index
    %c0_2 = arith.constant 0 : index
    %0 = vector.load %arg1[%c0, %c0_0, %c0_1, %c0_2] : memref<1x4x8x32xf32, #tpu.memory_space<vmem>>, vector<1x4x8x32xf32>
    %1 = vector.shape_cast %0 : vector<1x4x8x32xf32> to vector<4x8x32xf32>
    %cst = arith.constant 0.176776692 : f32
    %2 = vector.broadcast %cst : f32 to vector<4x8x32xf32>
    %3 = arith.mulf %1, %2 : vector<4x8x32xf32>
    %c0_3 = arith.constant 0 : index
    %c0_4 = arith.constant 0 : index
    %c0_5 = arith.constant 0 : index
    %c0_6 = arith.constant 0 : index
    %4 = vector.load %arg2[%c0_3, %c0_4, %c0_5, %c0_6] : memref<1x4x8x32xf32, #tpu.memory_space<vmem>>, vector<1x4x8x32xf32>
    %5 = vector.shape_cast %4 : vector<1x4x8x32xf32> to vector<4x8x32xf32>
    %c0_7 = arith.constant 0 : index
    %c0_8 = arith.constant 0 : index
    %c0_9 = arith.constant 0 : index
    %c0_10 = arith.constant 0 : index
    %6 = vector.load %arg3[%c0_7, %c0_8, %c0_9, %c0_10] : memref<1x4x8x32xf32, #tpu.memory_space<vmem>>, vector<1x4x8x32xf32>
    %7 = vector.shape_cast %6 : vector<1x4x8x32xf32> to vector<4x8x32xf32>
    %cst_11 = arith.constant dense<0.000000e+00> : vector<4x8x8xf32>
    %8 = tpu.matmul %3, %5, %cst_11 {dimension_numbers = #tpu.dot_dimension_numbers<[2], [2], [1], [1], [0, 0, 0, 1, 1, 1], [0], [0]>} : vector<4x8x32xf32>, vector<4x8x32xf32>, vector<4x8x8xf32> -> vector<4x8x8xf32>
    %cst_12 = arith.constant dense<0xFF800000> : vector<4x8xf32>
    %9 = vector.multi_reduction <maximumf>, %8, %cst_12 [2] : vector<4x8x8xf32> to vector<4x8xf32>
    %10 = vector.shape_cast %9 : vector<4x8xf32> to vector<4x8x1xf32>
    %11 = vector.broadcast %10 : vector<4x8x1xf32> to vector<4x8x8xf32>
    %12 = arith.subf %8, %11 : vector<4x8x8xf32>
    %13 = math.exp %12 : vector<4x8x8xf32>
    %cst_13 = arith.constant dense<0.000000e+00> : vector<4x8xf32>
    %14 = vector.multi_reduction <add>, %13, %cst_13 [2] : vector<4x8x8xf32> to vector<4x8xf32>
    %15 = vector.shape_cast %14 : vector<4x8xf32> to vector<4x8x1xf32>
    %16 = tpu.reciprocal %15 {approx = true} : vector<4x8x1xf32> -> vector<4x8x1xf32>
    %17 = vector.broadcast %16 : vector<4x8x1xf32> to vector<4x8x8xf32>
    %18 = arith.mulf %13, %17 : vector<4x8x8xf32>
    %cst_14 = arith.constant dense<0.000000e+00> : vector<4x8x32xf32>
    %19 = tpu.matmul %18, %7, %cst_14 {dimension_numbers = #tpu.dot_dimension_numbers<[2], [1], [1], [2], [0, 0, 0, 1, 1, 2], [0], [0]>} : vector<4x8x8xf32>, vector<4x8x32xf32>, vector<4x8x32xf32> -> vector<4x8x32xf32>
    %c0_15 = arith.constant 0 : index
    %c0_16 = arith.constant 0 : index
    %c0_17 = arith.constant 0 : index
    %c0_18 = arith.constant 0 : index
    %20 = vector.load %arg4[%c0_15, %c0_16, %c0_17, %c0_18] : memref<1x4x8x32xf32, #tpu.memory_space<vmem>>, vector<1x4x8x32xf32>
    %21 = vector.shape_cast %20 : vector<1x4x8x32xf32> to vector<4x8x32xf32>
    %22 = vector.shape_cast %19 : vector<4x8x32xf32> to vector<1x4x8x32xf32>
    tpu.vector_store %arg4[%c0_15, %c0_16, %c0_17, %c0_18], %22 {strides = array<i32>} : memref<1x4x8x32xf32, #tpu.memory_space<vmem>>, vector<1x4x8x32xf32>,
    return
  }
  func.func @transform_0(%arg0: i32) -> (i32, i32, i32, i32) {
    %c0_i32 = arith.constant 0 : i32
    %c0_i32_0 = arith.constant 0 : i32
    %c0_i32_1 = arith.constant 0 : i32
    %c0_i32_2 = arith.constant 0 : i32
    return %arg0, %c0_i32, %c0_i32_0, %c0_i32_1 : i32, i32, i32, i32
  }
  func.func @transform_1(%arg0: i32) -> (i32, i32, i32, i32) {
    %c0_i32 = arith.constant 0 : i32
    %c0_i32_0 = arith.constant 0 : i32
    %c0_i32_1 = arith.constant 0 : i32
    %c0_i32_2 = arith.constant 0 : i32
    return %arg0, %c0_i32, %c0_i32_0, %c0_i32_1 : i32, i32, i32, i32
  }
  func.func @transform_2(%arg0: i32) -> (i32, i32, i32, i32) {
    %c0_i32 = arith.constant 0 : i32
    %c0_i32_0 = arith.constant 0 : i32
    %c0_i32_1 = arith.constant 0 : i32
    %c0_i32_2 = arith.constant 0 : i32
    return %arg0, %c0_i32, %c0_i32_0, %c0_i32_1 : i32, i32, i32, i32
  }
  func.func @transform_3(%arg0: i32) -> (i32, i32, i32, i32) {
    %c0_i32 = arith.constant 0 : i32
    %c0_i32_0 = arith.constant 0 : i32
    %c0_i32_1 = arith.constant 0 : i32
    %c0_i32_2 = arith.constant 0 : i32
    return %arg0, %c0_i32, %c0_i32_0, %c0_i32_1 : i32, i32, i32, i32
  }
}

</mosaic_0001>

<bundles_post_ra>
// kernel: tpu_custom_call.1
= control target key start
LH: loop header
LB: loop body
LE: loop exit
PB: predicated region body
PF: predicated region fallthrough
CT: control target
= control target key end

     0   :  { %s1731_s0 = inlined_call_operand.hbm [shape: f32[2,4,8,32], index: 0, kind: input, shape index: {}]   ;;  %s1732_s1 = inlined_call_operand.hbm [shape: f32[2,4,8,32], index: 1, kind: input, shape index: {}]   ;;  %s1733_s2 = inlined_call_operand.hbm [shape: f32[2,4,8,32], index: 2, kind: input, shape index: {}]   ;;  %s1734_s3 = inlined_call_operand.hbm [shape: f32[2,4,8,32], index: 3, kind: output, shape index: {}]  }
   0x1   :  { %1741 = sst [smem:[#allocation12_spill]] %s1731_s0 }
   0x2   :  { %8 = vsyncpa [#allocation3], 0 }
   0x3   :  { %10 = vsyncpa [#allocation3 + $0x1], 0 }
   0x4   :  { %11 = vsyncpa [#allocation6], 0 }
   0x5   :  { %13 = vsyncpa [#allocation6 + $0x1], 0 }
   0x6   :  { %14 = vsyncpa [#allocation4], 0 }
   0x7   :  { %16 = vsyncpa [#allocation4 + $0x1], 0  ;;  %s1422_s12 = smov 0   ;;  %s1424_s13 = smov 0  }
   0x8   :  { %s1426_s14 = smov 0   ;;  %s1428_s15 = smov 0  }
   0x9 LB: > { %s1443_s16 = sadd.s32 4294967295, %s1390_s15   ;;  %s1058_s17 = sadd.s32 4294967294, %s1390_s15   ;;  %s1390_s15 = sphi %s1428_s15, %s1760_s15   ;;  %s1386_s14 = sphi %s1426_s14, %s1759_s14   ;;  %s1382_s13 = sphi %s1424_s13, %s1758_s13   ;;  %s1378_s12 = sphi %s1422_s12, %s1757_s12  }
   0xa   : > { %s1447_s18 = sadd.s32 1, %s1390_s15   ;;  %s29_s19 = sadd.s32 1, %s1386_s14 }
   0xb   : > { %s26_s20 = ssub.s32 %s1390_s15, %s1447_s18  ;;  %p36_p0 = scmp.ne.s32.totalorder %s1386_s14, %s1382_s13 }
   0xc   : > { %p27_p1 = scmp.eq.s32.totalorder %s26_s20, 0  ;;  %p37_p2 = scmp.eq.s32.totalorder %s1390_s15, 0 }
   0xd   : > { %p42_p3 = scmp.ne.s32.totalorder %s1382_s13, %s1378_s12  ;;  %p43_p4 = scmp.eq.s32.totalorder %s1443_s16, 0 }
   0xe   : > { %s1459_s21 = scalar_select %p27_p1, %s1386_s14, %s29_s19  }
   0xf   : > { %p38_p5 = por %p37_p2, %p36_p0  ;;  %p1461_p6 = por %p43_p4, %p42_p3 }
  0x10   : > { %p118_p7 = scmp.eq.s32.totalorder %s1443_s16, 1  ;;  %p124_p8 = scmp.eq.s32.totalorder %s1058_s17, 1 }
  0x11   : > { %s1742_s22 = scalar_select %p1461_p6, 1, 0 }
  0x12   : > { %p1174_p10 = scmp.lt.s32.totalorder %s1390_s15, 2  ;;  %p1468_p11 = por %p118_p7, %p36_p0 }
  0x13   : > { %p1472_p12 = por %p124_p8, %p42_p3  ;;  %s144_s25 = sand.u32 1, %s1386_s14  }
  0x14   : > { %s1743_s23 = scalar_select %p1468_p11, 1, 0 }
  0x15   : > { %s1744_s24 = scalar_select %p1472_p12, 1, 0 }
  0x16   : > { %s1478_s26 = sshll.u32 %s1390_s15, 9  ;;  %s1482_s27 = sshll.u32 %s144_s25, 5 }
  0x17   : > { %p1484_p13 = pnand %p1174_p10, %p38_p5  ;;  %s165_s29 = sand.u32 1, %s1390_s15  }
  0x18   : > { %s1493_s5 = scalar_lea.hbm %s1732_s1, %s1478_s26  ;;  %s169_s6 = scalar_lea.vmem [#allocation5], %s1482_s27 }
  0x19   : > { %s176_s7 = sshll.u32 %s169_s6, 4  ;;  %s1499_s8 = scalar_lea.sflag [#allocation6], %s165_s29  ;;  %s1496_s7 = int_to_ptr.vmem [resolvable:$true] %s176_s7 }
  0x1a   : > { %s1230_s9 = scalar_lea.hbm %s1493_s5, 512  ;;  %p1505_p2 = pneg %p1484_p13 }
  0x1b   : > { %p1231_p1 = scmp.ne.s32.totalorder %s1493_s5, %s1230_s9  ;;  %s1235_s19 = scalar_lea.hbm %s1732_s1, 1024 }
  0x1c   : > { %p1236_p5 = scmp.lt.u32.totalorder %s1493_s5, %s1732_s1  ;;  %p1237_p7 = scmp.lt.u32.totalorder %s1235_s19, %s1230_s9 }
  0x1d   : > { %p1233_p3 = pnand %p1505_p2, %p1231_p1  ;;  %p1239_p10 = scmp.lt.u32.totalorder %s1230_s9, %s1493_s5 }
  0x1e   : > { %p1238_p8 = por %p1237_p7, %p1236_p5 }
  0x1f   : > { %p1234_p4 = pneg %p1233_p3 }
  0x20   : > { %p1240_p9 = por %p1239_p10, %p1238_p8 }
  0x22   : > { %p1241_p0 = pnand %p1240_p9, %p1234_p4 }
  0x24   : > { %1244 = shalt.err (!%p1241_p0)
}
  0x25   : > { %s1245_s29 = scalar_lea.vmem %s1496_s7, 512  ;;  %s1392_s4 = smov [#allocation5]  }
  0x26   : > { %p1246_p1 = scmp.ne.s32.totalorder %s1496_s7, %s1245_s29  ;;  %s1250_s6 = sshll.u32 %s1392_s4, 4  ;;  %s1251_s6 = int_to_ptr.vmem [resolvable:$false] %s1250_s6 }
  0x27   : > { %s1252_s11 = scalar_lea.vmem %s1251_s6, 1024  ;;  %p1253_p11 = scmp.lt.s32.totalorder %s1496_s7, %s1251_s6 }
  0x28   : > { %p1248_p3 = pnand %p1246_p1, %p1505_p2  ;;  %p1254_p6 = scmp.lt.s32.totalorder %s1252_s11, %s1245_s29 }
  0x2a   : > { %p1249_p12 = pneg %p1248_p3  ;;  %p1255_p5 = por %p1254_p6, %p1253_p11 }
  0x2c   : > { %p1256_p7 = pnand %p1255_p5, %p1249_p12 }
  0x2e   : > { %1259 = shalt.err (!%p1256_p7)
}
  0x2f   : > { %s1737_s9 = smov 128   ;;  %s1739_s17 = smov 8  }
  0x30   : > { %1166 = dma.hbm_to_vmem [thread:$0]  (!%p1484_p13), %s1493_s5, 512, %s1496_s7, %s1499_s8, %s1737_s9, %s1737_s9, %s1739_s17  }
  0x31   : > { %p205_p6 = scmp.lt.s32.totalorder %s1390_s15, 3  ;;  %s1747_s0 = sld [smem:[#allocation12_spill]] }
  0x32   : > { %p1748_p9 = scmp.ge.s32.totalorder %s1390_s15, 1  ;;  %s148_s4 = scalar_lea.vmem [#allocation2], %s1482_s27 }
  0x33   : > { %s155_s6 = sshll.u32 %s148_s4, 4  ;;  %s1550_s5 = scalar_lea.sflag [#allocation3], %s144_s25  ;;  %s1546_s6 = int_to_ptr.vmem [resolvable:$true] %s155_s6 }
  0x34   : > { %p1541_p11 = pnand %p1748_p9, %p205_p6 }
  0x36   : > { %s1749_s29 = scalar_select %p1541_p11, 1, 0 }
  0x37   : > { %s1537_s30 = scalar_lea.hbm %s1747_s0, %s1478_s26  ;;  %s1265_s20 = scalar_lea.hbm %s1747_s0, 1024 }
  0x38   : > { %s1260_s7 = scalar_lea.hbm %s1537_s30, 512  ;;  %p1266_p8 = scmp.lt.u32.totalorder %s1537_s30, %s1747_s0 }
  0x39   : > { %p1261_p12 = scmp.ne.s32.totalorder %s1537_s30, %s1260_s7  ;;  %p1267_p10 = scmp.lt.u32.totalorder %s1265_s20, %s1260_s7 }
  0x3a   : > { %p1269_p3 = scmp.lt.u32.totalorder %s1260_s7, %s1537_s30 }
  0x3b   : > { %p1263_p0 = pnand %p1261_p12, %p1505_p2  ;;  %p1268_p1 = por %p1267_p10, %p1266_p8 }
  0x3d   : > { %p1264_p4 = pneg %p1263_p0  ;;  %p1270_p5 = por %p1269_p3, %p1268_p1 }
  0x3f   : > { %p1271_p7 = pnand %p1270_p5, %p1264_p4 }
  0x41   : > { %1274 = shalt.err (!%p1271_p7)
}
  0x42   : > { %s1275_s25 = scalar_lea.vmem %s1546_s6, 512  ;;  %s1395_s4 = smov [#allocation2]  }
  0x43   : > { %p1276_p6 = scmp.ne.s32.totalorder %s1546_s6, %s1275_s25  ;;  %s1280_s11 = sshll.u32 %s1395_s4, 4  ;;  %s1281_s11 = int_to_ptr.vmem [resolvable:$false] %s1280_s11 }
  0x44   : > { %s1282_s9 = scalar_lea.vmem %s1281_s11, 1024  ;;  %p1283_p0 = scmp.lt.s32.totalorder %s1546_s6, %s1281_s11 }
  0x45   : > { %p1278_p9 = pnand %p1276_p6, %p1505_p2  ;;  %p1284_p11 = scmp.lt.s32.totalorder %s1282_s9, %s1275_s25 }
  0x47   : > { %p1279_p12 = pneg %p1278_p9  ;;  %p1285_p8 = por %p1284_p11, %p1283_p0 }
  0x49   : > { %p1286_p10 = pnand %p1285_p8, %p1279_p12 }
  0x4b   : > { %1289 = shalt.err (!%p1286_p10)
}
  0x4c   : > { %s1750_s17 = smov 8   ;;  %s1751_s7 = smov 128  }
  0x4d   : > { %1163 = dma.hbm_to_vmem [thread:$0]  (!%p1484_p13), %s1537_s30, 512, %s1546_s6, %s1550_s5, %s1751_s7, %s1751_s7, %s1750_s17  }
  0x4e   : > { %s1581_s4 = scalar_lea.hbm %s1733_s2, %s1478_s26  ;;  %s190_s25 = scalar_lea.vmem [#allocation7], %s1482_s27 }
  0x4f   : > { %s197_s11 = sshll.u32 %s190_s25, 4  ;;  %s1290_s9 = scalar_lea.hbm %s1581_s4, 512  ;;  %s1584_s11 = int_to_ptr.vmem [resolvable:$true] %s197_s11 }
  0x50   : > { %p1291_p11 = scmp.ne.s32.totalorder %s1581_s4, %s1290_s9  ;;  %s1295_s6 = scalar_lea.hbm %s1733_s2, 1024 }
  0x51   : > { %p1296_p3 = scmp.lt.u32.totalorder %s1581_s4, %s1733_s2  ;;  %p1297_p5 = scmp.lt.u32.totalorder %s1295_s6, %s1290_s9 }
  0x52   : > { %p1293_p4 = pnand %p1291_p11, %p1505_p2  ;;  %p1299_p6 = scmp.lt.u32.totalorder %s1290_s9, %s1581_s4 }
  0x53   : > { %p1298_p7 = por %p1297_p5, %p1296_p3 }
  0x54   : > { %p1294_p1 = pneg %p1293_p4 }
  0x55   : > { %p1300_p9 = por %p1299_p6, %p1298_p7 }
  0x57   : > { %p1301_p12 = pnand %p1300_p9, %p1294_p1 }
  0x59   : > { %1304 = shalt.err (!%p1301_p12)
}
  0x5a   : > { %s1305_s27 = scalar_lea.vmem %s1584_s11, 512  ;;  %s1396_s0 = smov [#allocation7]  }
  0x5b   : > { %p1306_p0 = scmp.ne.s32.totalorder %s1584_s11, %s1305_s27  ;;  %s1310_s19 = sshll.u32 %s1396_s0, 4  ;;  %s1311_s19 = int_to_ptr.vmem [resolvable:$false] %s1310_s19 }
  0x5c   : > { %s1312_s20 = scalar_lea.vmem %s1311_s19, 1024  ;;  %p1313_p11 = scmp.lt.s32.totalorder %s1584_s11, %s1311_s19 }
  0x5d   : > { %p1308_p8 = pnand %p1306_p0, %p1505_p2  ;;  %p1314_p4 = scmp.lt.s32.totalorder %s1312_s20, %s1305_s27 }
  0x5f   : > { %p1309_p10 = pneg %p1308_p8  ;;  %p1315_p3 = por %p1314_p4, %p1313_p11 }
  0x61   : > { %p1316_p5 = pnand %p1315_p3, %p1309_p10 }
  0x63   : > { %1319 = shalt.err (!%p1316_p5)
}
  0x64   : > { %1169 = dma.hbm_to_vmem [thread:$0]  (!%p1484_p13), %s1581_s4, 512, %s1584_s11, %s1499_s8, %s1751_s7, %s1751_s7, %s1750_s17  }
  0x65   : > { %p1752_p2 = scmp.ne.s32.totalorder %s1749_s29, 0 }
  0x66   : > { %s1614_s10 = sand.u32 (!%p1752_p2), 1, %s1382_s13   ;;  %p1753_p1 = scmp.ne.s32.totalorder (!%p1752_p2), %s1742_s22, 0 }
  0x67   : > { %209 = sbr.rel (%p1752_p2) target bundleno = 881 (0x371), region = 32  ;;  %s1617_s25 = sshll.u32 (!%p1752_p2), %s1614_s10, 5 }
  0x68   : > { %s212_s28 = scalar_lea.sflag (!%p1752_p2), [#allocation3], %s1614_s10  ;;  %s215_s9 = scalar_lea.vmem (!%p1752_p2), [#allocation2], %s1617_s25 }
  0x6e   : > { %1365 = dma.done.wait (%p1753_p1), %s212_s28, 512  }
  0x6f   : > { %1367 = vsyncadd (%p1753_p1), %s212_s28, 4294966784  ;;  %s220_s8 = sand.u32 1, %s1443_s16   ;;  %s224_s17 = scalar_lea.vmem [#allocation5], %s1617_s25 }
  0x70   : > { %s221_s29 = scalar_lea.sflag [#allocation6], %s220_s8 }
  0x71   : > { %1369 = dma.done.wait (%p1753_p1), %s221_s29, 1024  }
  0x72   : > { %1371 = vsyncadd (%p1753_p1), %s221_s29, 4294966272  ;;  %v1397_v0 = vmov 0.0   ;;  %vm1398_vm0 = vmmov 0   ;;  %vm282_vm1 = vcmask 261120   ;;  %v274_v1 = vld [vmem:[%s224_s17] sm:$0xff]  ;;  %v275_v3 = vld [vmem:[%s224_s17 + $0x8] sm:$0xff] }
  0x73   : > { %1112 = vmatprep.subr.mxu0 %v1397_v0  ;;  %1114 = vmatprep.mubr.msk.f32.mxu0 %vm1398_vm0, %v1397_v0  ;;  %v266_v2 = vld [vmem:[%s215_s9] sm:$0xff]  ;;  %v267_v5 = vld [vmem:[%s215_s9 + $0x8] sm:$0xff]  ;;  %v268_v6 = vld [vmem:[%s215_s9 + $0x10] sm:$0xff]  ;;  %vm587_vm2 = vcmask 64512   ;;  %s233_s22 = scalar_lea.vmem [#allocation7], %s1617_s25  ;;  %s265_s7 = scalar_lea.vmem [#allocation8], %s1617_s25 }
  0x74   : > { %1117 = vmatprep.subr.mxu1 %v1397_v0  ;;  %1119 = vmatprep.mubr.msk.f32.mxu1 %vm1398_vm0, %v1397_v0  ;;  %v270_v4 = vmul.f32 0.17677669, %v266_v2  ;;  %v276_v7 = vld [vmem:[%s224_s17 + $0x10] sm:$0xff]  ;;  %v271_v8 = vmul.f32 0.17677669, %v267_v5  ;;  %v269_v9 = vld [vmem:[%s215_s9 + $0x18] sm:$0xff] }
  0x75   : > { %1113 = vmatpush3.xpose.msk.msra.mxu0 %vm282_vm1, %v274_v1  ;;  %1118 = vmatpush3.xpose.msk.msra.mxu1 %vm282_vm1, %v275_v3  ;;  %v277_v10 = vld [vmem:[%s224_s17 + $0x18] sm:$0xff]  ;;  %v272_v11 = vmul.f32 0.17677669, %v268_v6  ;;  %v273_v12 = vmul.f32 0.17677669, %v269_v9  ;;  %v278_v45 = vld [vmem:[%s233_s22] sm:$0xff] }
  0x76   : > { %1122 = vmatprep.subr.mxu0 %v1397_v0  ;;  %1127 = vmatprep.subr.mxu1 %v1397_v0  ;;  %v279_v46 = vld [vmem:[%s233_s22 + $0x8] sm:$0xff]  ;;  %v280_v53 = vld [vmem:[%s233_s22 + $0x10] sm:$0xff]  ;;  %v281_v57 = vld [vmem:[%s233_s22 + $0x18] sm:$0xff]  ;;  %s942_s4 = sshll.u32 %s265_s7, 4  ;;  %s1095_s11 = sshll.u32 %s1443_s16, 9  ;;  %s1679_s4 = int_to_ptr.vmem [resolvable:$true] %s942_s4 }
  0x77   : > { %s1686_s5 = scalar_lea.hbm %s1734_s3, %s1095_s11  ;;  %s929_s16 = scalar_lea.sflag [#allocation4], %s1614_s10 }
  0x78   : > { %1115 = vmatmul.mubr.msk.f32.vlgmr.msra.gmra.mrb[0].mxu0 %vm282_vm1, %v270_v4  ;;  %1120 = vmatmul.mubr.msk.f32.vlgmr.msra.gmra.mrb[0].mxu1 %vm282_vm1, %v271_v8  ;;  %s1320_s26 = scalar_lea.vmem %s1679_s4, 512  ;;  %p1754_p7 = scmp.ne.s32.totalorder %s1743_s23, 0 }
  0x79   : > { %1123 = vmatpush3.xpose.msk.msra.mxu0 %vm282_vm1, %v276_v7  ;;  %1124 = vmatprep.mubr.msk.f32.mxu0 %vm1398_vm0, %v1397_v0  ;;  %p1321_p13 = scmp.ne.s32.totalorder %s1679_s4, %s1320_s26  ;;  %s1399_s27 = smov [#allocation8]  }
  0x7a   : > { %1128 = vmatpush3.xpose.msk.msra.mxu1 %vm282_vm1, %v277_v10  ;;  %1129 = vmatprep.mubr.msk.f32.mxu1 %vm1398_vm0, %v1397_v0  ;;  %s1324_s0 = sshll.u32 %s1399_s27, 4  ;;  %s1325_s0 = int_to_ptr.vmem [resolvable:$false] %s1324_s0 }
  0x7b   : > { %1132 = vmatprep.subr.mxu0 %v1397_v0  ;;  %1137 = vmatprep.subr.mxu1 %v1397_v0  ;;  %p1322_p6 = pnand %p1321_p13, %p1754_p7  ;;  %s1326_s19 = scalar_lea.vmem %s1325_s0, 1024 }
  0x7c   : > { %1125 = vmatmul.mubr.msk.f32.vlgmr.msra.gmra.mrb[2].mxu0 %vm282_vm1, %v272_v11  ;;  %p1327_p12 = scmp.lt.s32.totalorder %s1679_s4, %s1325_s0  ;;  %p1328_p0 = scmp.lt.s32.totalorder %s1326_s19, %s1320_s26 }
  0x7d   : > { %1130 = vmatmul.mubr.msk.f32.vlgmr.msra.gmra.mrb[2].mxu1 %vm282_vm1, %v273_v12  ;;  %1134 = vmatprep.mubr.msk.f32.mxu0 %vm1398_vm0, %v1397_v0  ;;  %p1323_p9 = pneg %p1322_p6 }
  0x7e   : > { %1139 = vmatprep.mubr.msk.f32.mxu1 %vm1398_vm0, %v1397_v0  ;;  %1133 = vmatpush3.msra.mxu0 %v278_v45  ;;  %p1329_p8 = por %p1328_p0, %p1327_p12 }
  0x7f   : > { %1142 = vmatprep.subr.mxu0 %v1397_v0  ;;  %1138 = vmatpush3.msra.mxu1 %v279_v46 }
  0x80   : > { %1147 = vmatprep.subr.mxu1 %v1397_v0  ;;  %p1330_p10 = pnand %p1329_p8, %p1323_p9 }
 0x14b   : > { %v355_v13 = vpop.f32.mrb[0].mxu0  ;;  %v431_v14 = vpop.f32.mrb[0].mxu1 }
 0x14c   : > { %v1116_v15 = vpop.f32.mrb[1].mxu0  ;;  %v588_v16 = vsel %vm587_vm2, %v355_v13, -inf  ;;  %v1121_v17 = vpop.f32.mrb[1].mxu1  ;;  %v591_v18 = vsel %vm587_vm2, %v431_v14, -inf }
 0x14d   : > { %589 = vmax.xlane.f32.xlu0 %v588_v16 }
 0x14f   : > { %v507_v19 = vpop.f32.mrb[2].mxu0 }
 0x150   : > { %v1126_v20 = vpop.f32.mrb[3].mxu0  ;;  %v594_v21 = vsel %vm587_vm2, %v507_v19, -inf  ;;  %v583_v22 = vpop.f32.mrb[2].mxu1 }
 0x151   : > { %592 = vmax.xlane.f32.xlu0 %v591_v18  ;;  %595 = vmax.xlane.f32.xlu1 %v594_v21  ;;  %v1131_v23 = vpop.f32.mrb[3].mxu1  ;;  %v597_v24 = vsel %vm587_vm2, %v583_v22, -inf }
 0x155   : > { %598 = vmax.xlane.f32.xlu1 %v597_v24 }
 0x1da   : > { %v590_v25 = vpop.xlane.xlu0 %589 }
 0x1db   : > { %v600_v26 = vsub.f32 %v355_v13, %v590_v25 }
 0x1dd   : > { %v604_v27 = vmul.f32 1.442695, %v600_v26 }
 0x1de   : > { %v593_v28 = vpop.xlane.xlu0 %592  ;;  %v596_v29 = vpop.xlane.xlu1 %595 }
 0x1df   : > { %1214 = vpow2.f32 %v604_v27  ;;  %v601_v30 = vsub.f32 %v431_v14, %v593_v28  ;;  %v602_v31 = vsub.f32 %v507_v19, %v596_v29 }
 0x1e1   : > { %v606_v32 = vmul.f32 1.442695, %v601_v30  ;;  %v608_v33 = vmul.f32 1.442695, %v602_v31 }
 0x1e2   : > { %v599_v34 = vpop.xlane.xlu1 %598 }
 0x1e3   : > { %1216 = vpow2.f32 %v606_v32  ;;  %v603_v35 = vsub.f32 %v583_v22, %v599_v34 }
 0x1e4   : > { %1218 = vpow2.f32 %v608_v33 }
 0x1e5   : > { %v610_v36 = vmul.f32 1.442695, %v603_v35 }
 0x1e7   : > { %1220 = vpow2.f32 %v610_v36 }
 0x1e9   : > { %v1215_v37 = vpop.eup %1214 }
 0x1ea   : > { %v612_v38 = vsel %vm587_vm2, %v1215_v37, 0.0 }
 0x1eb   : > { %613 = vadd.xlane.f32.xlu0 %v612_v38 }
 0x1ed   : > { %v1217_v39 = vpop.eup %1216 }
 0x1ee   : > { %v1219_v40 = vpop.eup %1218  ;;  %v615_v41 = vsel %vm587_vm2, %v1217_v39, 0.0 }
 0x1ef   : > { %616 = vadd.xlane.f32.xlu1 %v615_v41  ;;  %v618_v42 = vsel %vm587_vm2, %v1219_v40, 0.0 }
 0x1f0   : > { %619 = vadd.xlane.f32.xlu0 %v618_v42 }
 0x1f1   : > { %v1221_v43 = vpop.eup %1220 }
 0x1f2   : > { %v621_v44 = vsel %vm587_vm2, %v1221_v43, 0.0 }
 0x1f3   : > { %622 = vadd.xlane.f32.xlu1 %v621_v44 }
 0x278   : > { %v614_v47 = vpop.xlane.xlu0 %613 }
 0x279   : > { %1222 = vrcp.f32 %v614_v47 }
 0x27c   : > { %v617_v48 = vpop.xlane.xlu1 %616 }
 0x27d   : > { %v620_v49 = vpop.xlane.xlu0 %619  ;;  %1224 = vrcp.f32 %v617_v48 }
 0x27e   : > { %1226 = vrcp.f32 %v620_v49 }
 0x280   : > { %v623_v50 = vpop.xlane.xlu1 %622 }
 0x281   : > { %1228 = vrcp.f32 %v623_v50 }
 0x283   : > { %v1223_v51 = vpop.eup %1222 }
 0x284   : > { %v628_v52 = vmul.f32 %v1223_v51, %v1215_v37 }
 0x286   : > { %1135 = vmatmul.mubr.msk.f32.vlgmr.msra.gmra.mrb[4].mxu0 %vm587_vm2, %v628_v52 }
 0x287   : > { %v1225_v54 = vpop.eup %1224  ;;  %1143 = vmatpush3.msra.mxu0 %v280_v53  ;;  %1144 = vmatprep.mubr.msk.f32.mxu0 %vm1398_vm0, %v1397_v0 }
 0x288   : > { %v1227_v55 = vpop.eup %1226  ;;  %v629_v56 = vmul.f32 %v1225_v54, %v1217_v39 }
 0x289   : > { %v630_v58 = vmul.f32 %v1227_v55, %v1219_v40 }
 0x28a   : > { %1140 = vmatmul.mubr.msk.f32.vlgmr.msra.gmra.mrb[4].mxu1 %vm587_vm2, %v629_v56 }
 0x28b   : > { %v1229_v59 = vpop.eup %1228  ;;  %1145 = vmatmul.mubr.msk.f32.vlgmr.msra.gmra.mrb[6].mxu0 %vm587_vm2, %v630_v58  ;;  %1148 = vmatpush3.msra.mxu1 %v281_v57 }
 0x28c   : > { %v631_v60 = vmul.f32 %v1229_v59, %v1221_v43  ;;  %1149 = vmatprep.mubr.msk.f32.mxu1 %vm1398_vm0, %v1397_v0 }
 0x28e   : > { %1150 = vmatmul.mubr.msk.f32.vlgmr.msra.gmra.mrb[6].mxu1 %vm587_vm2, %v631_v60 }
 0x359   : > { %v701_v61 = vpop.f32.mrb[4].mxu0 }
 0x35a   : > { %924 = vst.msk [vmem:[%s265_s7] sm:$0xff] %vm282_vm1, %v701_v61  ;;  %v1136_v62 = vpop.f32.mrb[5].mxu0 }
 0x35d   : > { %v774_v63 = vpop.f32.mrb[4].mxu1 }
 0x35e   : > { %925 = vst.msk [vmem:[%s265_s7 + $0x8] sm:$0xff] %vm282_vm1, %v774_v63  ;;  %v847_v1 = vpop.f32.mrb[6].mxu0  ;;  %v1141_v0 = vpop.f32.mrb[5].mxu1 }
 0x35f   : > { %926 = vst.msk [vmem:[%s265_s7 + $0x10] sm:$0xff] %vm282_vm1, %v847_v1  ;;  %v1146_v2 = vpop.f32.mrb[7].mxu0 }
 0x361   : > { %v920_v3 = vpop.f32.mrb[6].mxu1 }
 0x362   : > { %927 = vst.msk [vmem:[%s265_s7 + $0x18] sm:$0xff] %vm282_vm1, %v920_v3  ;;  %v1151_v4 = vpop.f32.mrb[7].mxu1 }
 0x363   : > { %1333 = shalt.err (!%p1330_p10)
}
 0x364   : > { %s1334_s20 = scalar_lea.hbm %s1686_s5, 512  ;;  %s1338_s9 = scalar_lea.hbm %s1734_s3, 1024 }
 0x365   : > { %p1335_p11 = scmp.ne.s32.totalorder %s1686_s5, %s1334_s20  ;;  %p1339_p5 = scmp.lt.u32.totalorder %s1686_s5, %s1734_s3 }
 0x366   : > { %p1340_p2 = scmp.lt.u32.totalorder %s1338_s9, %s1334_s20  ;;  %p1342_p13 = scmp.lt.u32.totalorder %s1334_s20, %s1686_s5 }
 0x367   : > { %p1336_p4 = pnand %p1335_p11, %p1754_p7 }
 0x368   : > { %p1341_p1 = por %p1340_p2, %p1339_p5 }
 0x369   : > { %p1337_p3 = pneg %p1336_p4 }
 0x36a   : > { %p1343_p6 = por %p1342_p13, %p1341_p1 }
 0x36c   : > { %p1344_p9 = pnand %p1343_p6, %p1337_p3 }
 0x36e   : > { %1347 = shalt.err (!%p1344_p9)
}
 0x36f   : > { %s1400_s17 = smov 128   ;;  %s1401_s22 = smov 8  }
 0x370   : > { %1158 = dma.vmem_to_hbm [thread:$0]  (%p1754_p7), %s1679_s4, 512, %s1686_s5, %s929_s16, %s1400_s17, %s1400_s17, %s1401_s22  }
 0x371 PF: > { %s957_s7 = sand.u32 1, %s1378_s12   ;;  %p1755_p12 = scmp.ne.s32.totalorder %s1744_s24, 0 }
 0x372   : > { %p1756_p0 = scmp.ge.s32.totalorder %s1390_s15, 2  ;;  %s958_s11 = scalar_lea.sflag [#allocation4], %s957_s7 }
 0x374   : > { %p1171_p8 = pnand %p1756_p0, %p1755_p12 }
 0x376   : > { %1373 = dma.done.wait (!%p1171_p8), %s958_s11, 512  }
 0x377   : > { %1375 = vsyncadd (!%p1171_p8), %s958_s11, 4294966784  ;;  %p19_p10 = scmp.ge.s32.totalorder %s1447_s18, 4   ;;  %s1757_s12 = smov %s1382_s13 }
 0x378   : > { %s1758_s13 = smov %s1386_s14  ;;  %s1759_s14 = smov %s1459_s21 }
 0x379   : > { %s1760_s15 = smov %s1447_s18  ;;  %21 = sbr.rel (!%p19_p10) target bundleno = 9 (0x9), region = 101 }
 0x380   :  { %963 = vsyncpa [#allocation3], 1 }
 0x381   :  { %965 = vsyncpa [#allocation3 + $0x1], 1 }
 0x382   :  { %966 = vsyncpa [#allocation6], 1 }
 0x383   :  { %968 = vsyncpa [#allocation6 + $0x1], 1 }
 0x384   :  { %969 = vsyncpa [#allocation4], 1 }
 0x385   :  { %971 = vsyncpa [#allocation4 + $0x1], 1 }

</bundles_post_ra>
